<compile_context>
chip_gen: v7x
topology: tpu7x:2x2x1
jax: 0.10.0
libtpu: 0.0.40
codegen_flags: <defaults>
</compile_context>

<pallas_src>
import jax
import jax.numpy as jnp
from jax.experimental import pallas as pl
from jax.experimental.pallas import tpu as pltpu

N_PAD = 128  # lane-dense padded width of the final layer (real num_classes sliced off)


def mlp_kernel(x_ref, w1_ref, b1_ref, w2_ref, b2_ref, w3_ref, b3_ref, o_ref):
    # x arrives as f32 (no wrapper cast => half the input HBM traffic); cast to bf16
    # just before the MXU op (VPU has slack in this DMA-bound kernel).
    x = x_ref[...].astype(jnp.bfloat16)

    # Layer 1: Linear(512, 256) + ReLU.  bf16 MXU matmul, f32 accumulate & elementwise.
    h1 = jnp.dot(x, w1_ref[...], preferred_element_type=jnp.float32)
    h1 = jnp.maximum(h1 + b1_ref[...], 0.0).astype(jnp.bfloat16)

    # Layer 2: Linear(256, 128) + ReLU.  SSA value feeds straight into the next dot
    # (no VMEM round trip).
    h2 = jnp.dot(h1, w2_ref[...], preferred_element_type=jnp.float32)
    h2 = jnp.maximum(h2 + b2_ref[...], 0.0).astype(jnp.bfloat16)

    # Layer 3: Linear(128, N_PAD) (zero-padded past num_classes, no activation),
    # lane-dense bf16 store.
    out = jnp.dot(h2, w3_ref[...], preferred_element_type=jnp.float32)
    o_ref[...] = (out + b3_ref[...]).astype(o_ref.dtype)


def prepare_params(params):
    """One-time prep (outside the hot path): transpose PyTorch (out,in) weights to
    (in,out), cast matmul operands to bf16, keep biases f32, and zero-pad the last
    layer to a lane-dense 128-wide output."""
    num_classes = params["w3"].shape[0]
    w1 = params["w1"].T.astype(jnp.bfloat16)                   # (512, 256)
    w2 = params["w2"].T.astype(jnp.bfloat16)                   # (256, 128)
    w3 = params["w3"].T.astype(jnp.bfloat16)                   # (128, num_classes)
    w3 = jnp.pad(w3, ((0, 0), (0, N_PAD - num_classes)))       # (128, 128), zero pad
    b1 = params["b1"].reshape(1, -1).astype(jnp.float32)
    b2 = params["b2"].reshape(1, -1).astype(jnp.float32)
    b3 = jnp.pad(params["b3"].reshape(1, -1).astype(jnp.float32),
                 ((0, 0), (0, N_PAD - num_classes)))
    return dict(w1=w1, b1=b1, w2=w2, b2=b2, w3=w3, b3=b3)


def _round_up(v, m):
    return ((v + m - 1) // m) * m


def traditional_classifier(x, p, num_classes=10):
    """x: [B, input_dim] float32.  p: output of prepare_params.  Returns bf16 logits."""
    B, D_in = x.shape
    H1 = p["w1"].shape[1]   # 256
    H2 = p["w2"].shape[1]   # 128

    # Batch tile:
    #  * large B: multiple of 128, up to 1024 rows (hits the ~85% HBM-roofline tiling
    #    regime and keeps double-buffered f32 x tiles + f32 intermediates well inside
    #    v5e's 16 MiB default scoped VMEM), but capped so the grid has >= 2 steps
    #    (v7x megacore shards the "parallel" axis across both TensorCores).
    #  * small B: smallest multiple of 8 covering B (x stays f32 in VMEM, so 8-row
    #    sublane granularity is already fully packed).
    if B >= 256:
        TB = min(1024, _round_up((B + 1) // 2, 128))
    else:
        TB = _round_up(max(B, 8), 8)
    n_blocks = pl.cdiv(B, TB)
    B_pad = n_blocks * TB

    xi = x
    if B_pad != B:
        # TODO(synk): for very large ragged B a small tail call would avoid this
        # full-array pad copy; for the sizes here it is negligible.
        xi = jnp.pad(xi, ((0, B_pad - B), (0, 0)))

    # Weight/bias specs: constant index_map -> VMEM-resident across all grid steps.
    resident = lambda shape: pl.BlockSpec(shape, lambda i: (0,) * len(shape))

    flops = 2 * B_pad * (D_in * H1 + H1 * H2 + H2 * N_PAD)
    bytes_accessed = (B_pad * D_in * 4                                    # f32 x in
                      + (p["w1"].size + p["w2"].size + p["w3"].size) * 2  # bf16 weights
                      + (p["b1"].size + p["b2"].size + p["b3"].size) * 4  # f32 biases
                      + B_pad * N_PAD * 2)                                # bf16 out

    out = pl.pallas_call(
        mlp_kernel,
        out_shape=jax.ShapeDtypeStruct((B_pad, N_PAD), jnp.bfloat16),
        grid=(n_blocks,),
        in_specs=[
            pl.BlockSpec((TB, D_in), lambda i: (i, 0)),          # x: batch-tiled, f32
            resident(p["w1"].shape), resident(p["b1"].shape),
            resident(p["w2"].shape), resident(p["b2"].shape),
            resident(p["w3"].shape), resident(p["b3"].shape),
        ],
        out_specs=pl.BlockSpec((TB, N_PAD), lambda i: (i, 0)),   # lane-dense bf16 output
        compiler_params=pltpu.CompilerParams(
            dimension_semantics=("parallel",),                   # shard batch on v7x TCs
        ),
        cost_estimate=pl.CostEstimate(flops=flops, transcendentals=0,
                                      bytes_accessed=bytes_accessed),
    )(xi, p["w1"], p["b1"], p["w2"], p["b2"], p["w3"], p["b3"])

    return out[:B, :num_classes]


def init_params(key, input_dim=512, num_classes=10):
    """Deterministic init matching the shapes in TraditionalClassifier.__init__."""
    dims = [(256, input_dim), (128, 256), (num_classes, 128)]
    params = {}
    for i, (out_f, in_f) in enumerate(dims, start=1):
        key, kw, kb = jax.random.split(key, 3)
        bound = 1.0 / (in_f ** 0.5)  # PyTorch-default-like uniform bound
        params[f"w{i}"] = jax.random.uniform(kw, (out_f, in_f), jnp.float32,
                                             minval=-bound, maxval=bound)
        params[f"b{i}"] = jax.random.uniform(kb, (out_f,), jnp.float32,
                                             minval=-bound, maxval=bound)
    return params


if __name__ == "__main__":
    key = jax.random.PRNGKey(0)
    kx, kp, kx2 = jax.random.split(key, 3)

    input_dim, num_classes = 512, 10
    params = init_params(kp, input_dim=input_dim, num_classes=num_classes)
    prepped = prepare_params(params)          # one-time, outside the hot path

    def ref_bf16(xf):
        # Reference mimicking kernel precision (bf16 matmuls, f32 accumulate/elementwise).
        w1 = params["w1"].T.astype(jnp.bfloat16)
        w2 = params["w2"].T.astype(jnp.bfloat16)
        w3 = params["w3"].T.astype(jnp.bfloat16)
        h = jnp.dot(xf.astype(jnp.bfloat16), w1, preferred_element_type=jnp.float32)
        h = jnp.maximum(h + params["b1"], 0.0).astype(jnp.bfloat16)
        h = jnp.dot(h, w2, preferred_element_type=jnp.float32)
        h = jnp.maximum(h + params["b2"], 0.0).astype(jnp.bfloat16)
        return jnp.dot(h, w3, preferred_element_type=jnp.float32) + params["b3"]

    def ref_f32(xf):
        # Exact f32 module math.
        h = jnp.maximum(xf @ params["w1"].T + params["b1"], 0.0)
        h = jnp.maximum(h @ params["w2"].T + params["b2"], 0.0)
        return h @ params["w3"].T + params["b3"]

    # Small-batch path (single grid step).
    x = jax.random.normal(kx, (8, input_dim), dtype=jnp.float32)
    out = jax.block_until_ready(traditional_classifier(x, prepped, num_classes))
    assert out.shape == (8, num_classes)
    out_f32 = out.astype(jnp.float32)
    assert jnp.allclose(out_f32, ref_bf16(x), atol=3e-2, rtol=2e-2), \
        float(jnp.max(jnp.abs(out_f32 - ref_bf16(x))))
    assert jnp.allclose(out_f32, ref_f32(x), atol=1e-1, rtol=1e-1)

    # Multi-block path (2 grid steps, ragged batch -> padded rows sliced off).
    x2 = jax.random.normal(kx2, (384, input_dim), dtype=jnp.float32)
    out2 = jax.block_until_ready(traditional_classifier(x2, prepped, num_classes))
    assert out2.shape == (384, num_classes)
    out2_f32 = out2.astype(jnp.float32)
    assert jnp.allclose(out2_f32, ref_bf16(x2), atol=3e-2, rtol=2e-2), \
        float(jnp.max(jnp.abs(out2_f32 - ref_bf16(x2))))
    assert jnp.allclose(out2_f32, ref_f32(x2), atol=1e-1, rtol=1e-1)

    print("KERNEL_OK")
</pallas_src>

<mosaic_0001>
module attributes {stable_mosaic.version = 11 : i64} {
  func.func @mlp_kernel(%arg0: i32, %arg1: memref<8x512xf32, #tpu.memory_space<vmem>>, %arg2: memref<512x256xbf16, #tpu.memory_space<vmem>>, %arg3: memref<1x256xf32, #tpu.memory_space<vmem>>, %arg4: memref<256x128xbf16, #tpu.memory_space<vmem>>, %arg5: memref<1x128xf32, #tpu.memory_space<vmem>>, %arg6: memref<128x128xbf16, #tpu.memory_space<vmem>>, %arg7: memref<1x128xf32, #tpu.memory_space<vmem>>, %arg8: memref<8x128xbf16, #tpu.memory_space<vmem>>) attributes {dimension_semantics = [#tpu.dimension_semantics<parallel>], iteration_bounds = array<i64: 1>, scalar_prefetch = 0 : i64, scratch_operands = 0 : i64, tpu.core_type = #tpu.core_type<tc>, window_params = [{transform_indices = @transform_0, window_bounds = array<i64: 8, 512>}, {pipeline_mode = #tpu.pipeline_mode<synchronous>, transform_indices = @transform_1, window_bounds = array<i64: 512, 256>}, {pipeline_mode = #tpu.pipeline_mode<synchronous>, transform_indices = @transform_2, window_bounds = array<i64: 1, 256>}, {pipeline_mode = #tpu.pipeline_mode<synchronous>, transform_indices = @transform_3, window_bounds = array<i64: 256, 128>}, {pipeline_mode = #tpu.pipeline_mode<synchronous>, transform_indices = @transform_4, window_bounds = array<i64: 1, 128>}, {pipeline_mode = #tpu.pipeline_mode<synchronous>, transform_indices = @transform_5, window_bounds = array<i64: 128, 128>}, {pipeline_mode = #tpu.pipeline_mode<synchronous>, transform_indices = @transform_6, window_bounds = array<i64: 1, 128>}, {transform_indices = @transform_7, window_bounds = array<i64: 8, 128>}]} {
    %c0 = arith.constant 0 : index
    %c0_0 = arith.constant 0 : index
    %0 = vector.load %arg1[%c0, %c0_0] : memref<8x512xf32, #tpu.memory_space<vmem>>, vector<8x512xf32>
    %1 = arith.truncf %0 : vector<8x512xf32> to vector<8x512xbf16>
    %c0_1 = arith.constant 0 : index
    %c0_2 = arith.constant 0 : index
    %2 = vector.load %arg2[%c0_1, %c0_2] : memref<512x256xbf16, #tpu.memory_space<vmem>>, vector<512x256xbf16>
    %cst = arith.constant dense<0.000000e+00> : vector<8x256xf32>
    %3 = tpu.matmul %1, %2, %cst {dimension_numbers = #tpu.dot_dimension_numbers<[1], [0], [0], [1], [0, 0, 1, 1], [], []>} : vector<8x512xbf16>, vector<512x256xbf16>, vector<8x256xf32> -> vector<8x256xf32>
    %c0_3 = arith.constant 0 : index
    %c0_4 = arith.constant 0 : index
    %4 = vector.load %arg3[%c0_3, %c0_4] : memref<1x256xf32, #tpu.memory_space<vmem>>, vector<1x256xf32>
    %5 = vector.broadcast %4 : vector<1x256xf32> to vector<8x256xf32>
    %6 = arith.addf %3, %5 : vector<8x256xf32>
    %cst_5 = arith.constant 0.000000e+00 : f32
    %7 = vector.broadcast %cst_5 : f32 to vector<8x256xf32>
    %8 = arith.maximumf %6, %7 : vector<8x256xf32>
    %9 = arith.truncf %8 : vector<8x256xf32> to vector<8x256xbf16>
    %c0_6 = arith.constant 0 : index
    %c0_7 = arith.constant 0 : index
    %10 = vector.load %arg4[%c0_6, %c0_7] : memref<256x128xbf16, #tpu.memory_space<vmem>>, vector<256x128xbf16>
    %cst_8 = arith.constant dense<0.000000e+00> : vector<8x128xf32>
    %11 = tpu.matmul %9, %10, %cst_8 {dimension_numbers = #tpu.dot_dimension_numbers<[1], [0], [0], [1], [0, 0, 1, 1], [], []>} : vector<8x256xbf16>, vector<256x128xbf16>, vector<8x128xf32> -> vector<8x128xf32>
    %c0_9 = arith.constant 0 : index
    %c0_10 = arith.constant 0 : index
    %12 = vector.load %arg5[%c0_9, %c0_10] : memref<1x128xf32, #tpu.memory_space<vmem>>, vector<1x128xf32>
    %13 = vector.broadcast %12 : vector<1x128xf32> to vector<8x128xf32>
    %14 = arith.addf %11, %13 : vector<8x128xf32>
    %cst_11 = arith.constant 0.000000e+00 : f32
    %15 = vector.broadcast %cst_11 : f32 to vector<8x128xf32>
    %16 = arith.maximumf %14, %15 : vector<8x128xf32>
    %17 = arith.truncf %16 : vector<8x128xf32> to vector<8x128xbf16>
    %c0_12 = arith.constant 0 : index
    %c0_13 = arith.constant 0 : index
    %18 = vector.load %arg6[%c0_12, %c0_13] : memref<128x128xbf16, #tpu.memory_space<vmem>>, vector<128x128xbf16>
    %cst_14 = arith.constant dense<0.000000e+00> : vector<8x128xf32>
    %19 = tpu.matmul %17, %18, %cst_14 {dimension_numbers = #tpu.dot_dimension_numbers<[1], [0], [0], [1], [0, 0, 1, 1], [], []>} : vector<8x128xbf16>, vector<128x128xbf16>, vector<8x128xf32> -> vector<8x128xf32>
    %c0_15 = arith.constant 0 : index
    %c0_16 = arith.constant 0 : index
    %20 = vector.load %arg7[%c0_15, %c0_16] : memref<1x128xf32, #tpu.memory_space<vmem>>, vector<1x128xf32>
    %21 = vector.broadcast %20 : vector<1x128xf32> to vector<8x128xf32>
    %22 = arith.addf %19, %21 : vector<8x128xf32>
    %23 = arith.truncf %22 : vector<8x128xf32> to vector<8x128xbf16>
    %c0_17 = arith.constant 0 : index
    %c0_18 = arith.constant 0 : index
    %24 = vector.load %arg8[%c0_17, %c0_18] : memref<8x128xbf16, #tpu.memory_space<vmem>>, vector<8x128xbf16>
    tpu.vector_store %arg8[%c0_17, %c0_18], %23 {strides = array<i32>} : memref<8x128xbf16, #tpu.memory_space<vmem>>, vector<8x128xbf16>,
    return
  }
  func.func @transform_0(%arg0: i32) -> (i32, i32) {
    %c0_i32 = arith.constant 0 : i32
    %c0_i32_0 = arith.constant 0 : i32
    return %arg0, %c0_i32 : i32, i32
  }
  func.func @transform_1(%arg0: i32) -> (i32, i32) {
    %c0_i32 = arith.constant 0 : i32
    %c0_i32_0 = arith.constant 0 : i32
    %c0_i32_1 = arith.constant 0 : i32
    return %c0_i32, %c0_i32_0 : i32, i32
  }
  func.func @transform_2(%arg0: i32) -> (i32, i32) {
    %c0_i32 = arith.constant 0 : i32
    %c0_i32_0 = arith.constant 0 : i32
    %c0_i32_1 = arith.constant 0 : i32
    return %c0_i32, %c0_i32_0 : i32, i32
  }
  func.func @transform_3(%arg0: i32) -> (i32, i32) {
    %c0_i32 = arith.constant 0 : i32
    %c0_i32_0 = arith.constant 0 : i32
    %c0_i32_1 = arith.constant 0 : i32
    return %c0_i32, %c0_i32_0 : i32, i32
  }
  func.func @transform_4(%arg0: i32) -> (i32, i32) {
    %c0_i32 = arith.constant 0 : i32
    %c0_i32_0 = arith.constant 0 : i32
    %c0_i32_1 = arith.constant 0 : i32
    return %c0_i32, %c0_i32_0 : i32, i32
  }
  func.func @transform_5(%arg0: i32) -> (i32, i32) {
    %c0_i32 = arith.constant 0 : i32
    %c0_i32_0 = arith.constant 0 : i32
    %c0_i32_1 = arith.constant 0 : i32
    return %c0_i32, %c0_i32_0 : i32, i32
  }
  func.func @transform_6(%arg0: i32) -> (i32, i32) {
    %c0_i32 = arith.constant 0 : i32
    %c0_i32_0 = arith.constant 0 : i32
    %c0_i32_1 = arith.constant 0 : i32
    return %c0_i32, %c0_i32_0 : i32, i32
  }
  func.func @transform_7(%arg0: i32) -> (i32, i32) {
    %c0_i32 = arith.constant 0 : i32
    %c0_i32_0 = arith.constant 0 : i32
    return %arg0, %c0_i32 : i32, i32
  }
}

</mosaic_0001>

<bundles_post_ra>
// kernel: tpu_custom_call.1
= control target key start
LH: loop header
LB: loop body
LE: loop exit
PB: predicated region body
PF: predicated region fallthrough
CT: control target
= control target key end

     0   :  { %12 = vsyncpa [#allocation3], 0  ;;  %s1394_s0 = inlined_call_operand.hbm [shape: f32[8,512], index: 0, kind: input, shape index: {}]   ;;  %s1395_s1 = inlined_call_operand.hbm [shape: bf16[512,256], index: 1, kind: input, shape index: {}]   ;;  %s1396_s2 = inlined_call_operand.vmem [shape: f32[1,256], index: 2, kind: input, shape index: {}]   ;;  %s1397_s3 = inlined_call_operand.hbm [shape: bf16[256,128], index: 3, kind: input, shape index: {}]   ;;  %s1398_s4 = inlined_call_operand.vmem [shape: f32[1,128], index: 4, kind: input, shape index: {}]   ;;  %s1399_s5 = inlined_call_operand.hbm [shape: bf16[128,128], index: 5, kind: input, shape index: {}]   ;;  %s1400_s6 = inlined_call_operand.vmem [shape: f32[1,128], index: 6, kind: input, shape index: {}]   ;;  %s1401_s7 = inlined_call_operand.hbm [shape: bf16[8,128], index: 7, kind: output, shape index: {}]  }
   0x1   :  { %13 = vsyncpa [#allocation6], 0 }
   0x2   :  { %14 = vsyncpa [#allocation9], 0 }
   0x3   :  { %15 = vsyncpa [#allocation4], 0  ;;  %s1274_s24 = smov [#allocation5]   ;;  %s1156_s28 = scalar_lea.hbm %s1395_s1, 8192 }
   0x4   :  { %s31_s25 = sshll.u32 %s1274_s24, 4  ;;  %p1157_p0 = scmp.ne.s32.totalorder %s1395_s1, %s1156_s28  ;;  %s32_s25 = int_to_ptr.vmem [resolvable:$true] %s31_s25 }
   0x5   :  { %p1160_p1 = scmp.lt.u32.totalorder %s1156_s28, %s1395_s1 }
   0x7   :  { %p1162_p2 = pnand %p1160_p1, %p1157_p0 }
   0x9   :  { %1165 = shalt.err (!%p1162_p2)
}
   0xa   :  { %s1166_s10 = scalar_lea.vmem %s32_s25, 8192  ;;  %p1171_p4 = scmp.lt.s32.totalorder %s32_s25, %s32_s25 }
   0xb   :  { %p1167_p3 = scmp.ne.s32.totalorder %s32_s25, %s1166_s10  ;;  %p1172_p5 = scmp.lt.s32.totalorder %s1166_s10, %s1166_s10 }
   0xd   :  { %p1173_p6 = por %p1172_p5, %p1171_p4 }
   0xf   :  { %p1174_p7 = pnand %p1173_p6, %p1167_p3 }
  0x11   :  { %1177 = shalt.err (!%p1174_p7)
}
  0x12   :  { %s1275_s11 = smov 128   ;;  %s1276_s12 = smov 8  }
  0x13   :  { %37 = dma.hbm_to_vmem [thread:$0]  %s1395_s1, 8192, %s32_s25, [#allocation6], %s1275_s11, %s1275_s11, %s1276_s12  }
  0x14   :  { %s1277_s15 = smov [#allocation2]   ;;  %s1278_s17 = smov [#allocation7]  }
  0x15   :  { %s22_s16 = sshll.u32 %s1277_s15, 4  ;;  %s45_s18 = sshll.u32 %s1278_s17, 4  ;;  %s23_s16 = int_to_ptr.vmem [resolvable:$true] %s22_s16  ;;  %s46_s18 = int_to_ptr.vmem [resolvable:$true] %s45_s18 }
  0x16   :  { %s1178_s21 = scalar_lea.hbm %s1394_s0, 512 }
  0x17   :  { %p1179_p8 = scmp.ne.s32.totalorder %s1394_s0, %s1178_s21  ;;  %p1182_p9 = scmp.lt.u32.totalorder %s1178_s21, %s1394_s0 }
  0x19   :  { %p1184_p10 = pnand %p1182_p9, %p1179_p8 }
  0x1b   :  { %1187 = shalt.err (!%p1184_p10)
}
  0x1c   :  { %s1188_s1 = scalar_lea.vmem %s23_s16, 512  ;;  %p1193_p12 = scmp.lt.s32.totalorder %s23_s16, %s23_s16 }
  0x1d   :  { %p1189_p11 = scmp.ne.s32.totalorder %s23_s16, %s1188_s1  ;;  %p1194_p13 = scmp.lt.s32.totalorder %s1188_s1, %s1188_s1 }
  0x1f   :  { %p1195_p0 = por %p1194_p13, %p1193_p12 }
  0x21   :  { %p1196_p1 = pnand %p1195_p0, %p1189_p11 }
  0x23   :  { %1199 = shalt.err (!%p1196_p1)
}
  0x24   :  { %25 = dma.hbm_to_vmem [thread:$0]  %s1394_s0, 512, %s23_s16, [#allocation3]  }
  0x25   :  { %s1200_s30 = scalar_lea.hbm %s1397_s3, 2048 }
  0x26   :  { %p1201_p2 = scmp.ne.s32.totalorder %s1397_s3, %s1200_s30  ;;  %p1204_p3 = scmp.lt.u32.totalorder %s1200_s30, %s1397_s3 }
  0x28   :  { %p1206_p4 = pnand %p1204_p3, %p1201_p2 }
  0x2a   :  { %1209 = shalt.err (!%p1206_p4)
}
  0x2b   :  { %s1210_s12 = scalar_lea.vmem %s46_s18, 2048  ;;  %p1215_p6 = scmp.lt.s32.totalorder %s46_s18, %s46_s18 }
  0x2c   :  { %p1211_p5 = scmp.ne.s32.totalorder %s46_s18, %s1210_s12  ;;  %p1216_p7 = scmp.lt.s32.totalorder %s1210_s12, %s1210_s12 }
  0x2e   :  { %p1217_p8 = por %p1216_p7, %p1215_p6 }
  0x30   :  { %p1218_p9 = pnand %p1217_p8, %p1211_p5 }
  0x32   :  { %1221 = shalt.err (!%p1218_p9)
}
  0x33   :  { %s1279_s0 = smov 64   ;;  %s1280_s13 = smov 4  }
  0x34   :  { %51 = dma.hbm_to_vmem [thread:$0]  %s1397_s3, 2048, %s46_s18, [#allocation6], %s1279_s0, %s1279_s0, %s1280_s13  }
  0x35   :  { %s1281_s16 = smov [#allocation8]   ;;  %s1222_s21 = scalar_lea.hbm %s1399_s5, 1024 }
  0x36   :  { %s59_s17 = sshll.u32 %s1281_s16, 4  ;;  %p1223_p10 = scmp.ne.s32.totalorder %s1399_s5, %s1222_s21  ;;  %s60_s17 = int_to_ptr.vmem [resolvable:$true] %s59_s17 }
  0x37   :  { %p1226_p11 = scmp.lt.u32.totalorder %s1222_s21, %s1399_s5 }
  0x39   :  { %p1228_p12 = pnand %p1226_p11, %p1223_p10 }
  0x3b   :  { %1231 = shalt.err (!%p1228_p12)
}
  0x3c   :  { %s1232_s1 = scalar_lea.vmem %s60_s17, 1024  ;;  %p1237_p0 = scmp.lt.s32.totalorder %s60_s17, %s60_s17 }
  0x3d   :  { %p1233_p13 = scmp.ne.s32.totalorder %s60_s17, %s1232_s1  ;;  %p1238_p1 = scmp.lt.s32.totalorder %s1232_s1, %s1232_s1 }
  0x3f   :  { %p1239_p2 = por %p1238_p1, %p1237_p0 }
  0x41   :  { %p1240_p3 = pnand %p1239_p2, %p1233_p13 }
  0x43   :  { %1243 = shalt.err (!%p1240_p3)
}
  0x44   :  { %65 = dma.hbm_to_vmem [thread:$0]  %s1399_s5, 1024, %s60_s17, [#allocation9], %s1279_s0, %s1279_s0, %s1280_s13  }
  0x45   :  { %1266 = dma.done.wait [#allocation3], 512  }
  0x46   :  { %1267 = vsyncadd [#allocation3], 4294966784 }
  0x47   :  { %1268 = dma.done.wait [#allocation6], 10240  }
  0x48   :  { %1269 = vsyncadd [#allocation6], 4294957056 }
  0x49   :  { %1270 = dma.done.wait [#allocation9], 1024  }
  0x4a   :  { %1271 = vsyncadd [#allocation9], 4294966272  ;;  %v1036_v0 = vld [vmem:[#allocation5 + $0x4] ss:$8 sps:$4 sm:$0xff]   ;;  %v1038_v1 = vld [vmem:[#allocation5] ss:$8 sps:$4 sm:$0xff]  }
  0x4b   :  { %485 = vmatprep.subr.bf16.mxu0 %v1036_v0  ;;  %v1039_v2 = vld [vmem:[#allocation5 + $0x14] ss:$8 sps:$4 sm:$0xff]   ;;  %v1041_v3 = vld [vmem:[#allocation5 + $0x10] ss:$8 sps:$4 sm:$0xff]   ;;  %v1042_v4 = vld [vmem:[#allocation5 + $0x24] ss:$8 sps:$4 sm:$0xff]  }
  0x4c   :  { %486 = vmatpush1.bf16.msra.mxu0 %v1038_v1  ;;  %v1044_v5 = vld [vmem:[#allocation5 + $0x20] ss:$8 sps:$4 sm:$0xff]   ;;  %v1045_v6 = vld [vmem:[#allocation5 + $0x34] ss:$8 sps:$4 sm:$0xff]   ;;  %v1047_v7 = vld [vmem:[#allocation5 + $0x30] ss:$8 sps:$4 sm:$0xff]  }
  0x4d   :  { %487 = vmatprep.subr.bf16.mxu0 %v1039_v2  ;;  %v1048_v8 = vld [vmem:[#allocation5 + $0x44] ss:$8 sps:$4 sm:$0xff]   ;;  %v1050_v9 = vld [vmem:[#allocation5 + $0x40] ss:$8 sps:$4 sm:$0xff]   ;;  %v1051_v10 = vld [vmem:[#allocation5 + $0x54] ss:$8 sps:$4 sm:$0xff]  }
  0x4e   :  { %v1053_v11 = vld [vmem:[#allocation5 + $0x50] ss:$8 sps:$4 sm:$0xff]   ;;  %v1054_v12 = vld [vmem:[#allocation5 + $0x64] ss:$8 sps:$4 sm:$0xff]   ;;  %v1056_v15 = vld [vmem:[#allocation5 + $0x60] ss:$8 sps:$4 sm:$0xff]  }
  0x4f   :  { %v82_v13 = vld [vmem:[#allocation2 + $0x8] sm:$0xff]  ;;  %v1057_v16 = vld [vmem:[#allocation5 + $0x74] ss:$8 sps:$4 sm:$0xff]   ;;  %v1059_v17 = vld [vmem:[#allocation5 + $0x70] ss:$8 sps:$4 sm:$0xff]   ;;  %vm1283_vm0 = vmmov 0  }
  0x50   :  { %488 = vmatpush1.bf16.msra.mxu0 %v1041_v3  ;;  %v86_v14 = vpack.c.bf16 %v82_v13, %v82_v13  ;;  %v1060_v18 = vld [vmem:[#allocation5 + $0x84] ss:$8 sps:$4 sm:$0xff]   ;;  %v1062_v19 = vld [vmem:[#allocation5 + $0x80] ss:$8 sps:$4 sm:$0xff]   ;;  %v1063_v20 = vld [vmem:[#allocation5 + $0x94] ss:$8 sps:$4 sm:$0xff]  }
  0x51   :  { %489 = vmatprep.subr.bf16.mxu0 %v1042_v4  ;;  %v1065_v21 = vld [vmem:[#allocation5 + $0x90] ss:$8 sps:$4 sm:$0xff]   ;;  %v1066_v22 = vld [vmem:[#allocation5 + $0xa4] ss:$8 sps:$4 sm:$0xff]   ;;  %v1068_v23 = vld [vmem:[#allocation5 + $0xa0] ss:$8 sps:$4 sm:$0xff]  }
  0x52   :  { %517 = vmatprep.mubr.bf16.mxu0 %v86_v14  ;;  %v1069_v24 = vld [vmem:[#allocation5 + $0xb4] ss:$8 sps:$4 sm:$0xff]   ;;  %v1071_v25 = vld [vmem:[#allocation5 + $0xb0] ss:$8 sps:$4 sm:$0xff]   ;;  %v1072_v26 = vld [vmem:[#allocation5 + $0xc4] ss:$8 sps:$4 sm:$0xff]  }
  0x53   :  { %v1132_v27 = vld [vmem:[#allocation7 + $0x40] sm:$0xff]   ;;  %v1075_v30 = vld [vmem:[#allocation5 + $0xd4] ss:$8 sps:$4 sm:$0xff]   ;;  %v1134_v31 = vld [vmem:[#allocation7 + $0x48] sm:$0xff]   ;;  %s1284_s30 = smov [#allocation10]  }
  0x54   :  { %490 = vmatpush1.bf16.msra.mxu0 %v1044_v5  ;;  %v1074_v28 = vld [vmem:[#allocation5 + $0xc0] ss:$8 sps:$4 sm:$0xff]   ;;  %968 = vmatprep.subr.bf16.mxu1 %v1132_v27  ;;  %v1136_v33 = vld [vmem:[#allocation7 + $0x50] sm:$0xff]   ;;  %v1078_v35 = vld [vmem:[#allocation5 + $0xe4] ss:$8 sps:$4 sm:$0xff]   ;;  %s867_s8 = sshll.u32 %s1284_s30, 4  ;;  %s868_s8 = int_to_ptr.vmem [resolvable:$true] %s867_s8 }
  0x55   :  { %491 = vmatprep.subr.bf16.mxu0 %v1045_v6  ;;  %v1133_v29 = vld [vmem:[#allocation7] sm:$0xff]   ;;  %v1135_v32 = vld [vmem:[#allocation7 + $0x8] sm:$0xff]   ;;  %v1077_v34 = vld [vmem:[#allocation5 + $0xd0] ss:$8 sps:$4 sm:$0xff]   ;;  %p1249_p5 = scmp.lt.s32.totalorder %s868_s8, %s868_s8 }
  0x56   :  { %969 = vmatpush3.bf16.msra.mxu1 %v1133_v29  ;;  %v1137_v36 = vld [vmem:[#allocation7 + $0x10] sm:$0xff]   ;;  %v1138_v37 = vld [vmem:[#allocation7 + $0x58] sm:$0xff]   ;;  %v1080_v38 = vld [vmem:[#allocation5 + $0xe0] ss:$8 sps:$4 sm:$0xff]  }
  0x57   :  { %970 = vmatprep.subr.bf16.mxu1 %v1134_v31  ;;  %v1081_v39 = vld [vmem:[#allocation5 + $0xf4] ss:$8 sps:$4 sm:$0xff]   ;;  %v1140_v41 = vld [vmem:[#allocation7 + $0x60] sm:$0xff]   ;;  %v1083_v42 = vld [vmem:[#allocation5 + $0xf0] ss:$8 sps:$4 sm:$0xff]  }
  0x58   :  { %492 = vmatpush1.bf16.msra.mxu0 %v1047_v7  ;;  %v1139_v40 = vld [vmem:[#allocation7 + $0x18] sm:$0xff]   ;;  %v81_v43 = vld [vmem:[#allocation2] sm:$0xff]  ;;  %v1142_v47 = vld [vmem:[#allocation7 + $0x68] sm:$0xff]  }
  0x59   :  { %493 = vmatprep.subr.bf16.mxu0 %v1048_v8  ;;  %v1141_v44 = vld [vmem:[#allocation7 + $0x20] sm:$0xff]   ;;  %v84_v46 = vld [vmem:[#allocation2 + $0x18] sm:$0xff]  ;;  %v85_v49 = vpack.c.bf16 %v81_v43, %v81_v43  ;;  %v1143_v52 = vld [vmem:[#allocation7 + $0x28] sm:$0xff]  }
  0x5a   :  { %971 = vmatpush3.bf16.msra.mxu1 %v1135_v32  ;;  %v1086_v45 = vld [vmem:[#allocation5 + $0x104] ss:$8 sps:$4 sm:$0xff]   ;;  %v1084_v48 = vld [vmem:[#allocation5 + $0x100] ss:$8 sps:$4 sm:$0xff]   ;;  %v88_v50 = vpack.c.bf16 %v84_v46, %v84_v46  ;;  %v1089_v51 = vld [vmem:[#allocation5 + $0x114] ss:$8 sps:$4 sm:$0xff]  }
  0x5b   :  { %972 = vmatprep.subr.bf16.mxu1 %v1136_v33  ;;  %v1087_v53 = vld [vmem:[#allocation5 + $0x110] ss:$8 sps:$4 sm:$0xff]   ;;  %v1092_v54 = vld [vmem:[#allocation5 + $0x124] ss:$8 sps:$4 sm:$0xff]   ;;  %v1090_v55 = vld [vmem:[#allocation5 + $0x120] ss:$8 sps:$4 sm:$0xff]  }
  0x5c   :  { %494 = vmatpush1.bf16.msra.mxu0 %v1050_v9  ;;  %v1095_v56 = vld [vmem:[#allocation5 + $0x134] ss:$8 sps:$4 sm:$0xff]   ;;  %v1093_v57 = vld [vmem:[#allocation5 + $0x130] ss:$8 sps:$4 sm:$0xff]   ;;  %v1098_v58 = vld [vmem:[#allocation5 + $0x144] ss:$8 sps:$4 sm:$0xff]  }
  0x5d   :  { %495 = vmatprep.subr.bf16.mxu0 %v1051_v10  ;;  %v1096_v59 = vld [vmem:[#allocation5 + $0x140] ss:$8 sps:$4 sm:$0xff]   ;;  %v1101_v60 = vld [vmem:[#allocation5 + $0x154] ss:$8 sps:$4 sm:$0xff]   ;;  %v1099_v61 = vld [vmem:[#allocation5 + $0x150] ss:$8 sps:$4 sm:$0xff]  }
  0x5e   :  { %973 = vmatpush3.bf16.msra.mxu1 %v1137_v36  ;;  %v1104_v62 = vld [vmem:[#allocation5 + $0x164] ss:$8 sps:$4 sm:$0xff]   ;;  %v1102_v63 = vld [vmem:[#allocation5 + $0x160] ss:$8 sps:$4 sm:$0xff]   ;;  %v1107_v0 = vld [vmem:[#allocation5 + $0x174] ss:$8 sps:$4 sm:$0xff]  }
  0x5f   :  { %974 = vmatprep.subr.bf16.mxu1 %v1138_v37  ;;  %v1105_v1 = vld [vmem:[#allocation5 + $0x170] ss:$8 sps:$4 sm:$0xff]   ;;  %v1110_v2 = vld [vmem:[#allocation5 + $0x184] ss:$8 sps:$4 sm:$0xff]   ;;  %v1108_v3 = vld [vmem:[#allocation5 + $0x180] ss:$8 sps:$4 sm:$0xff]  }
  0x60   :  { %496 = vmatpush1.bf16.msra.mxu0 %v1053_v11  ;;  %v1113_v4 = vld [vmem:[#allocation5 + $0x194] ss:$8 sps:$4 sm:$0xff]   ;;  %v1111_v5 = vld [vmem:[#allocation5 + $0x190] ss:$8 sps:$4 sm:$0xff]   ;;  %v1116_v6 = vld [vmem:[#allocation5 + $0x1a4] ss:$8 sps:$4 sm:$0xff]  }
  0x61   :  { %497 = vmatprep.subr.bf16.mxu0 %v1054_v12  ;;  %v1114_v7 = vld [vmem:[#allocation5 + $0x1a0] ss:$8 sps:$4 sm:$0xff]   ;;  %v1119_v8 = vld [vmem:[#allocation5 + $0x1b4] ss:$8 sps:$4 sm:$0xff]   ;;  %v1117_v9 = vld [vmem:[#allocation5 + $0x1b0] ss:$8 sps:$4 sm:$0xff]  }
  0x62   :  { %975 = vmatpush3.bf16.msra.mxu1 %v1139_v40  ;;  %v1122_v10 = vld [vmem:[#allocation5 + $0x1c4] ss:$8 sps:$4 sm:$0xff]   ;;  %v1120_v11 = vld [vmem:[#allocation5 + $0x1c0] ss:$8 sps:$4 sm:$0xff]   ;;  %v1125_v12 = vld [vmem:[#allocation5 + $0x1d4] ss:$8 sps:$4 sm:$0xff]  }
  0x63   :  { %976 = vmatprep.subr.bf16.mxu1 %v1140_v41  ;;  %v1123_v13 = vld [vmem:[#allocation5 + $0x1d0] ss:$8 sps:$4 sm:$0xff]   ;;  %v1128_v14 = vld [vmem:[#allocation5 + $0x1e4] ss:$8 sps:$4 sm:$0xff]  }
  0x64   :  { %498 = vmatpush1.bf16.msra.mxu0 %v1056_v15  ;;  %v1126_v15 = vld [vmem:[#allocation5 + $0x1e0] ss:$8 sps:$4 sm:$0xff]  }
  0x65   :  { %499 = vmatprep.subr.bf16.mxu0 %v1057_v16  ;;  %v1131_v16 = vld [vmem:[#allocation5 + $0x1f4] ss:$8 sps:$4 sm:$0xff]   ;;  %v1148_v41 = vld [vmem:[#allocation8] sm:$0xff]   ;;  %v1149_v43 = vld [vmem:[#allocation8 + $0x8] sm:$0xff]  }
  0x66   :  { %977 = vmatpush3.bf16.msra.mxu1 %v1141_v44  ;;  %v1150_v44 = vld [vmem:[#allocation8 + $0x10] sm:$0xff]   ;;  %v1152_v46 = vld [vmem:[#allocation8 + $0x20] sm:$0xff]  }
  0x67   :  { %978 = vmatprep.subr.bf16.mxu1 %v1142_v47  ;;  %v1153_v47 = vld [vmem:[#allocation8 + $0x28] sm:$0xff]  }
  0x68   :  { %500 = vmatpush1.bf16.msra.mxu0 %v1059_v17  ;;  %v1129_v17 = vld [vmem:[#allocation5 + $0x1f0] ss:$8 sps:$4 sm:$0xff]  }
  0x69   :  { %501 = vmatprep.subr.bf16.mxu0 %v1060_v18  ;;  %v83_v18 = vld [vmem:[#allocation2 + $0x10] sm:$0xff] }
  0x6a   :  { %979 = vmatpush3.bf16.msra.mxu1 %v1143_v52 }
  0x6c   :  { %502 = vmatpush1.bf16.msra.mxu0 %v1062_v19  ;;  %v87_v19 = vpack.c.bf16 %v83_v18, %v83_v18 }
  0x6d   :  { %503 = vmatprep.subr.bf16.mxu0 %v1063_v20  ;;  %v1144_v20 = vld [vmem:[#allocation7 + $0x70] sm:$0xff]  }
  0x6e   :  { %980 = vmatprep.subr.bf16.mxu1 %v1144_v20 }
  0x70   :  { %504 = vmatpush1.bf16.msra.mxu0 %v1065_v21  ;;  %v1145_v21 = vld [vmem:[#allocation7 + $0x30] sm:$0xff]  }
  0x71   :  { %505 = vmatprep.subr.bf16.mxu0 %v1066_v22  ;;  %981 = vmatpush3.bf16.msra.mxu1 %v1145_v21  ;;  %v1146_v22 = vld [vmem:[#allocation7 + $0x78] sm:$0xff]  }
  0x72   :  { %982 = vmatprep.subr.bf16.mxu1 %v1146_v22 }
  0x74   :  { %506 = vmatpush1.bf16.msra.mxu0 %v1068_v23  ;;  %v1147_v23 = vld [vmem:[#allocation7 + $0x38] sm:$0xff]  }
  0x75   :  { %507 = vmatprep.subr.bf16.mxu0 %v1069_v24  ;;  %983 = vmatpush3.bf16.msra.mxu1 %v1147_v23  ;;  %v1282_v24 = vmov 0.0  }
  0x76   :  { %999 = vmatprep.subr.bf16.mxu1 %v1282_v24 }
  0x78   :  { %508 = vmatpush1.bf16.msra.mxu0 %v1071_v25  ;;  %v155_v25 = vlaneseq }
  0x79   :  { %509 = vmatprep.subr.bf16.mxu0 %v1072_v26 }
  0x7a   :  { %v156_v26 = vshrl.u32 %v155_v25, 7 }
  0x7c   :  { %510 = vmatpush1.bf16.msra.mxu0 %v1074_v28  ;;  %v157_v27 = vsub.s32 0, %v156_v26  ;;  %v153_v28 = vld [vmem:[%s1396_s2] sm:$0x3]  ;;  %v161_v29 = vsub.s32 1, %v156_v26 }
  0x7d   :  { %511 = vmatprep.subr.bf16.mxu0 %v1075_v30 }
  0x7e   :  { %v158_v30 = vrot.slane %v153_v28, %v157_v27  ;;  %v162_v31 = vrot.slane %v153_v28, %v161_v29 }
  0x80   :  { %512 = vmatpush1.bf16.msra.mxu0 %v1077_v34 }
  0x81   :  { %513 = vmatprep.subr.bf16.mxu0 %v1078_v35 }
  0x84   :  { %514 = vmatpush1.bf16.msra.mxu0 %v1080_v38 }
  0x85   :  { %515 = vmatprep.subr.bf16.mxu0 %v1081_v39 }
  0x88   :  { %516 = vmatpush1.bf16.msra.mxu0 %v1083_v42 }
  0x89   :  { %526 = vmatprep.subr.bf16.mxu0 %v1086_v45  ;;  %v1151_v45 = vld [vmem:[#allocation8 + $0x18] sm:$0xff]  }
  0x8b   :  { %518 = vmatmul.mubr.bf16.vlgmr.msra.gmra.mrb[0].mxu0 %v85_v49  ;;  %v1155_v49 = vld [vmem:[#allocation8 + $0x38] sm:$0xff]  }
  0x8c   :  { %527 = vmatpush1.bf16.msra.mxu0 %v1084_v48  ;;  %558 = vmatprep.mubr.bf16.mxu0 %v88_v50  ;;  %v1154_v48 = vld [vmem:[#allocation8 + $0x30] sm:$0xff]  }
  0x8d   :  { %528 = vmatprep.subr.bf16.mxu0 %v1089_v51  ;;  %v942_v51 = vld [vmem:[%s1398_s4] ss:$0 sm:$0xff]  ;;  %s1244_s4 = scalar_lea.vmem %s868_s8, 64 }
  0x8e   :  { %p1245_p4 = scmp.ne.s32.totalorder %s868_s8, %s1244_s4  ;;  %p1250_p6 = scmp.lt.s32.totalorder %s1244_s4, %s1244_s4 }
  0x90   :  { %529 = vmatpush1.bf16.msra.mxu0 %v1087_v53  ;;  %p1251_p7 = por %p1250_p6, %p1249_p5 }
  0x91   :  { %530 = vmatprep.subr.bf16.mxu0 %v1092_v54 }
  0x92   :  { %p1252_p8 = pnand %p1251_p7, %p1245_p4 }
  0x94   :  { %531 = vmatpush1.bf16.msra.mxu0 %v1090_v55 }
  0x95   :  { %532 = vmatprep.subr.bf16.mxu0 %v1095_v56 }
  0x98   :  { %533 = vmatpush1.bf16.msra.mxu0 %v1093_v57 }
  0x99   :  { %534 = vmatprep.subr.bf16.mxu0 %v1098_v58 }
  0x9c   :  { %535 = vmatpush1.bf16.msra.mxu0 %v1096_v59  ;;  %v959_v59 = vld [vmem:[%s1400_s6] ss:$0 sm:$0xff] }
  0x9d   :  { %536 = vmatprep.subr.bf16.mxu0 %v1101_v60 }
  0xa0   :  { %537 = vmatpush1.bf16.msra.mxu0 %v1099_v61 }
  0xa1   :  { %538 = vmatprep.subr.bf16.mxu0 %v1104_v62 }
  0xa4   :  { %539 = vmatpush1.bf16.msra.mxu0 %v1102_v63 }
  0xa5   :  { %540 = vmatprep.subr.bf16.mxu0 %v1107_v0 }
  0xa8   :  { %541 = vmatpush1.bf16.msra.mxu0 %v1105_v1 }
  0xa9   :  { %542 = vmatprep.subr.bf16.mxu0 %v1110_v2 }
  0xac   :  { %543 = vmatpush1.bf16.msra.mxu0 %v1108_v3 }
  0xad   :  { %544 = vmatprep.subr.bf16.mxu0 %v1113_v4 }
  0xb0   :  { %545 = vmatpush1.bf16.msra.mxu0 %v1111_v5 }
  0xb1   :  { %546 = vmatprep.subr.bf16.mxu0 %v1116_v6 }
  0xb4   :  { %547 = vmatpush1.bf16.msra.mxu0 %v1114_v7 }
  0xb5   :  { %548 = vmatprep.subr.bf16.mxu0 %v1119_v8 }
  0xb8   :  { %549 = vmatpush1.bf16.msra.mxu0 %v1117_v9 }
  0xb9   :  { %550 = vmatprep.subr.bf16.mxu0 %v1122_v10 }
  0xbc   :  { %551 = vmatpush1.bf16.msra.mxu0 %v1120_v11 }
  0xbd   :  { %552 = vmatprep.subr.bf16.mxu0 %v1125_v12 }
  0xc0   :  { %553 = vmatpush1.bf16.msra.mxu0 %v1123_v13 }
  0xc1   :  { %554 = vmatprep.subr.bf16.mxu0 %v1128_v14 }
  0xc4   :  { %555 = vmatpush1.bf16.msra.mxu0 %v1126_v15 }
  0xc5   :  { %556 = vmatprep.subr.bf16.mxu0 %v1131_v16 }
  0xc8   :  { %557 = vmatpush1.bf16.msra.mxu0 %v1129_v17 }
  0xcb   :  { %559 = vmatmul.mubr.bf16.vlgmr.msra.gmra.mrb[0].mxu0 %v87_v19 }
 0x19e   :  { %v560_v32 = vpop.f32.mrb[0].mxu0 }
 0x19f   :  { %v1019_v33 = vadd.f32 %v560_v32, %v158_v30  ;;  %v562_v34 = vpop.f32.mrb[1].mxu0 }
 0x1a0   :  { %v1020_v35 = vadd.f32 %v562_v34, %v162_v31  ;;  %v564_v36 = vpop.f32.mrb[2].mxu0 }
 0x1a1   :  { %v567_v37 = vmax.f32 %v1019_v33, 0.0  ;;  %v565_v38 = vpop.f32.mrb[3].mxu0 }
 0x1a2   :  { %v568_v39 = vmax.f32 %v1020_v35, 0.0 }
 0x1a3   :  { %v569_v42 = vpack.c.bf16 %v567_v37, %v567_v37 }
 0x1a4   :  { %v570_v40 = vpack.c.bf16 %v568_v39, %v568_v39 }
 0x1a6   :  { %738 = vmatprep.mubr.bf16.mxu1 %v570_v40 }
 0x1a7   :  { %739 = vmatmul.mubr.bf16.vlgmr.msra.gmra.mrb[0].mxu1 %v569_v42 }
 0x1a8   :  { %1000 = vmatpush3.bf16.msra.mxu1 %v1148_v41  ;;  %1015 = vmatprep.mubr.msk.bf16.mxu1 %vm1283_vm0, %v1282_v24 }
 0x1a9   :  { %1001 = vmatprep.subr.bf16.mxu1 %v1282_v24 }
 0x1ac   :  { %1002 = vmatpush3.bf16.msra.mxu1 %v1149_v43 }
 0x1ad   :  { %1003 = vmatprep.subr.bf16.mxu1 %v1282_v24 }
 0x1b0   :  { %1004 = vmatpush3.bf16.msra.mxu1 %v1150_v44 }
 0x1b1   :  { %1005 = vmatprep.subr.bf16.mxu1 %v1282_v24 }
 0x1b4   :  { %1006 = vmatpush3.bf16.msra.mxu1 %v1151_v45 }
 0x1b5   :  { %1007 = vmatprep.subr.bf16.mxu1 %v1282_v24 }
 0x1b8   :  { %1008 = vmatpush3.bf16.msra.mxu1 %v1152_v46 }
 0x1b9   :  { %1009 = vmatprep.subr.bf16.mxu1 %v1282_v24 }
 0x1bc   :  { %1010 = vmatpush3.bf16.msra.mxu1 %v1153_v47 }
 0x1bd   :  { %1011 = vmatprep.subr.bf16.mxu1 %v1282_v24 }
 0x1c0   :  { %1012 = vmatpush3.bf16.msra.mxu1 %v1154_v48 }
 0x1c1   :  { %1013 = vmatprep.subr.bf16.mxu1 %v1282_v24 }
 0x1c4   :  { %1014 = vmatpush3.bf16.msra.mxu1 %v1155_v49 }
 0x27a   :  { %v984_v50 = vpop.f32.mrb[0].mxu1 }
 0x27b   :  { %v985_v52 = vpop.f32.mrb[1].mxu1 }
 0x27c   :  { %v986_v53 = vadd.f32 %v985_v52, %v984_v50  ;;  %v987_v54 = vpop.f32.mrb[2].mxu1 }
 0x27d   :  { %v988_v55 = vpop.f32.mrb[3].mxu1 }
 0x27e   :  { %v741_v56 = vadd.f32 %v986_v53, %v942_v51 }
 0x280   :  { %v746_v57 = vmax.f32 %v741_v56, 0.0 }
 0x282   :  { %v747_v58 = vpack.c.bf16 %v746_v57, %v746_v57 }
 0x284   :  { %1016 = vmatmul.mubr.bf16.vlgmr.msra.gmra.mrb[4].mxu1 %v747_v58 }
 0x357   :  { %v853_v60 = vpop.f32.mrb[4].mxu1 }
 0x358   :  { %v854_v61 = vadd.f32 %v959_v59, %v853_v60  ;;  %v1017_v62 = vpop.f32.mrb[5].mxu1 }
 0x359   :  { %v856_v63 = vpop.f32.mrb[6].mxu1 }
 0x35a   :  { %v859_v0 = vpack.c.bf16 %v854_v61, %v854_v61  ;;  %v1018_v1 = vpop.f32.mrb[7].mxu1 }
 0x35c   :  { %860 = vst [vmem:[#allocation10] sm:$0xf] %v859_v0 }
 0x35d   :  { %1255 = shalt.err (!%p1252_p8)
}
 0x35e   :  { %s1256_s6 = scalar_lea.hbm %s1401_s7, 64 }
 0x35f   :  { %p1257_p9 = scmp.ne.s32.totalorder %s1401_s7, %s1256_s6  ;;  %p1260_p10 = scmp.lt.u32.totalorder %s1256_s6, %s1401_s7 }
 0x361   :  { %p1262_p11 = pnand %p1260_p10, %p1257_p9 }
 0x363   :  { %1265 = shalt.err (!%p1262_p11)
}
 0x364   :  { %870 = dma.vmem_to_hbm [thread:$0]  %s868_s8, 64, %s1401_s7, [#allocation4]  }
 0x365   :  { %1272 = dma.done.wait [#allocation4], 64  }
 0x366   :  { %1273 = vsyncadd [#allocation4], 4294967232 }
 0x367   :  { %874 = vsyncpa [#allocation3], 1 }
 0x368   :  { %875 = vsyncpa [#allocation6], 1 }
 0x369   :  { %876 = vsyncpa [#allocation9], 1 }
 0x36a   :  { %877 = vsyncpa [#allocation4], 1 }

</bundles_post_ra>
